<compile_context>
chip_gen: v7x
topology: tpu7x:2x2x1
jax: 0.10.0
libtpu: 0.0.40
codegen_flags: <defaults>
</compile_context>

<pallas_src>
import functools

import jax
import jax.numpy as jnp
from jax.experimental import pallas as pl
from jax.experimental.pallas import tpu as pltpu

LANE = 512          # lane-dense slab width (multiple of 128 -> unmasked stores)
BLOCK_ROWS = 1024   # 1024 x 512 f32 = 2 MiB per operand per grid step


def _clip_kernel(clip_ref, x_ref, o_ref):
    # clip_ref: SMEM (1,) f32 scalar; x_ref/o_ref: VMEM (block_rows, LANE) tiles.
    cv = clip_ref[0]
    x = x_ref[...].astype(jnp.float32)
    o_ref[...] = jnp.clip(x, -cv, cv).astype(o_ref.dtype)


def _clip_lane_dense(x2d, clip_value):
    """x2d: [rows, LANE] (any float dtype), clip_value: f32 scalar -> clamped [rows, LANE]."""
    rows, lane = x2d.shape
    br = min(BLOCK_ROWS, rows)              # full-extent block if the array is small
    grid = (pl.cdiv(rows, br),)             # Pallas masks the partial edge block
    clip_arr = jnp.reshape(clip_value.astype(jnp.float32), (1,))

    return pl.pallas_call(
        _clip_kernel,
        out_shape=jax.ShapeDtypeStruct((rows, lane), x2d.dtype),
        grid=grid,
        in_specs=[
            pl.BlockSpec(memory_space=pltpu.SMEM),        # clip value scalar
            pl.BlockSpec((br, lane), lambda i: (i, 0)),   # lane-dense waveform slab
        ],
        out_specs=pl.BlockSpec((br, lane), lambda i: (i, 0)),
        compiler_params=pltpu.CompilerParams(
            dimension_semantics=("parallel",),            # shards rows across TCs (v7x)
        ),
    )(clip_arr, x2d)


@functools.partial(jax.jit, static_argnames=("clip_low", "clip_high", "clip_prob"))
def do_clip(waveforms, key, clip_low=0.5, clip_high=1.0, clip_prob=1.0):
    """JAX/Pallas equivalent of DoClip.forward.

    waveforms: float[time] or float[time, channels] (dtype preserved)
    key: jax PRNG key (replaces the module's torch.rand calls)
    """
    k_prob, k_clip = jax.random.split(key)

    prob_draw = jax.random.uniform(k_prob, (), dtype=jnp.float32)
    clip_draw = jax.random.uniform(k_clip, (), dtype=jnp.float32)
    clip_value = clip_draw * (clip_high - clip_low) + clip_low
    # "skip clipping" == clamp to [-inf, inf]
    clip_value = jnp.where(prob_draw > clip_prob,
                           jnp.asarray(jnp.inf, jnp.float32), clip_value)

    wf = jnp.asarray(waveforms)             # dtype preserved (no forced f32 upcast)
    orig_shape = wf.shape
    n = wf.size
    flat = wf.reshape(-1)                   # contiguous reshape: no HBM copy

    rem = n % LANE
    if rem == 0:
        # Copy-free hot path: pure metadata reshape to a lane-dense slab.
        x2d = flat.reshape(n // LANE, LANE)
        out = _clip_lane_dense(x2d, clip_value).reshape(orig_shape)
    else:
        # TODO(synk): ragged lengths pay one pad+slice HBM pass; a split
        # main/tail path would trade that for a concat copy, so keep it simple.
        pad = LANE - rem
        x2d = jnp.pad(flat, (0, pad)).reshape((n + pad) // LANE, LANE)
        out2d = _clip_lane_dense(x2d, clip_value)
        out = out2d.reshape(-1)[:n].reshape(orig_shape)

    # PyTorch does .squeeze() at the end (removes all size-1 dims).
    return jnp.squeeze(out)


if __name__ == "__main__":
    key = jax.random.PRNGKey(0)
    k_data, k_aug = jax.random.split(key)

    # [time, channels] waveform; 256*4 = 1024 elements -> copy-free lane-dense path.
    time, channels = 256, 4
    waveforms = jax.random.normal(k_data, (time, channels), dtype=jnp.float32)

    out = jax.block_until_ready(
        do_clip(waveforms, k_aug, clip_low=0.5, clip_high=1.0, clip_prob=1.0))

    # Reference check in plain JAX with the same random draws.
    k_prob, k_clip = jax.random.split(k_aug)
    clip_draw = jax.random.uniform(k_clip, (), dtype=jnp.float32)
    cv = clip_draw * (1.0 - 0.5) + 0.5
    ref = jnp.squeeze(jnp.clip(waveforms, -cv, cv))
    assert out.shape == ref.shape
    assert float(jnp.max(jnp.abs(out - ref))) < 1e-6
    assert float(jnp.max(jnp.abs(out))) <= float(cv) + 1e-6

    # 1-D ragged-length path (exercises the pad fallback; 300 % 512 != 0).
    wf1d = jax.random.normal(k_data, (300,), dtype=jnp.float32)
    out1d = jax.block_until_ready(do_clip(wf1d, k_aug))
    ref1d = jnp.clip(wf1d, -cv, cv)
    assert out1d.shape == (300,)
    assert float(jnp.max(jnp.abs(out1d - ref1d))) < 1e-6

    print("KERNEL_OK")
</pallas_src>

<mosaic_0001>
module attributes {stable_mosaic.version = 11 : i64} {
  func.func @_clip_kernel(%arg0: i32, %arg1: memref<1xf32, #tpu.memory_space<smem>>, %arg2: memref<2x512xf32, #tpu.memory_space<vmem>>, %arg3: memref<2x512xf32, #tpu.memory_space<vmem>>) attributes {dimension_semantics = [#tpu.dimension_semantics<parallel>], iteration_bounds = array<i64: 1>, scalar_prefetch = 0 : i64, scratch_operands = 0 : i64, tpu.core_type = #tpu.core_type<tc>, window_params = [{transform_indices = @transform_0, window_bounds = array<i64: 1>}, {transform_indices = @transform_1, window_bounds = array<i64: 2, 512>}, {transform_indices = @transform_2, window_bounds = array<i64: 2, 512>}]} {
    %c0 = arith.constant 0 : index
    %0 = memref.load %arg1[%c0] : memref<1xf32, #tpu.memory_space<smem>>
    %c0_0 = arith.constant 0 : index
    %c0_1 = arith.constant 0 : index
    %1 = vector.load %arg2[%c0_0, %c0_1] : memref<2x512xf32, #tpu.memory_space<vmem>>, vector<2x512xf32>
    %cst = arith.constant 0.000000e+00 : f32
    %2 = arith.subf %cst, %0 : f32
    %3 = vector.broadcast %2 : f32 to vector<2x512xf32>
    %4 = arith.maximumf %3, %1 : vector<2x512xf32>
    %5 = vector.broadcast %0 : f32 to vector<2x512xf32>
    %6 = arith.minimumf %5, %4 : vector<2x512xf32>
    %c0_2 = arith.constant 0 : index
    %c0_3 = arith.constant 0 : index
    %7 = vector.load %arg3[%c0_2, %c0_3] : memref<2x512xf32, #tpu.memory_space<vmem>>, vector<2x512xf32>
    tpu.vector_store %arg3[%c0_2, %c0_3], %6 {strides = array<i32>} : memref<2x512xf32, #tpu.memory_space<vmem>>, vector<2x512xf32>,
    return
  }
  func.func @transform_0(%arg0: i32) -> i32 {
    %c0_i32 = arith.constant 0 : i32
    %c0_i32_0 = arith.constant 0 : i32
    return %c0_i32 : i32
  }
  func.func @transform_1(%arg0: i32) -> (i32, i32) {
    %c0_i32 = arith.constant 0 : i32
    %c0_i32_0 = arith.constant 0 : i32
    return %arg0, %c0_i32 : i32, i32
  }
  func.func @transform_2(%arg0: i32) -> (i32, i32) {
    %c0_i32 = arith.constant 0 : i32
    %c0_i32_0 = arith.constant 0 : i32
    return %arg0, %c0_i32 : i32, i32
  }
}

</mosaic_0001>

<bundles_post_ra>
// kernel: do_clip.3
= control target key start
LH: loop header
LB: loop body
LE: loop exit
PB: predicated region body
PF: predicated region fallthrough
CT: control target
= control target key end

     0   :  { %s51_s0 = inlined_call_operand.<no memory space> [shape: f32[1], index: 0, kind: input, shape index: {}]   ;;  %s52_s1 = inlined_call_operand.vmem [shape: f32[2,512], index: 1, kind: input, shape index: {}]   ;;  %s53_s2 = inlined_call_operand.vmem [shape: f32[2,512], index: 2, kind: output, shape index: {}]  }
   0x1   :  { %v13_v0 = vld [vmem:[%s52_s1] sm:$0xff]  ;;  %s14_s13 = ssub.f32 0.0, %s51_s0  ;;  %v17_v2 = vstv %s51_s0 }
   0x3   :  { %v15_v1 = vstv %s14_s13 }
   0x4   :  { %v16_v3 = vmax.f32 %v15_v1, %v13_v0 }
   0x6   :  { %v18_v4 = vmin.f32 %v17_v2, %v16_v3 }
   0x8   :  { %19 = vst [vmem:[%s53_s2] sm:$0xff] %v18_v4 }

</bundles_post_ra>
